<compile_context>
chip_gen: v7x
topology: tpu7x:2x2x1
jax: 0.10.0
libtpu: 0.0.40
codegen_flags: <defaults>
</compile_context>

<pallas_src>
import functools

import jax
import jax.numpy as jnp
from jax.experimental import pallas as pl
from jax.experimental.pallas import tpu as pltpu

_LANE = 128


def _round_up(x, m):
    return ((x + m - 1) // m) * m


def _tpu_resources():
    """Best-effort (vmem_capacity_bytes, device_kind) query with safe fallbacks."""
    vmem_cap = None
    try:
        info = pltpu.get_tpu_info()
        cap = getattr(info, "vmem_capacity_bytes", None)
        if cap:
            vmem_cap = int(cap)
    except Exception:
        vmem_cap = None
    if not vmem_cap:
        vmem_cap = 64 * 1024 * 1024          # conservative (v7x-sized) fallback
    try:
        kind = jax.devices()[0].device_kind.lower()
    except Exception:
        kind = ""
    return vmem_cap, kind


def _rbf_apply(z, centers_scaled, c2g_row, w, gamma, compute_dtype, exp_bf16):
    """One RKHS layer applied to rows `z` [rows, F_in]:

        exponent = 2*g*(z . c) - g*||z||^2 - g*||c||^2   ( == -g*||z - c||^2, clamped <= 0 )
        out      = exp(exponent) @ W                      -> [rows, F_out]  (float32)

    `centers_scaled` = 2*g*c (compute_dtype), `c2g_row` = -g*||c||^2 as a [1, n_pad] f32 row.
    Both matmuls run on the MXU with float32 accumulation; on v6e/v7x the exp runs in bf16 on the
    EUP and its result feeds the second matmul directly.
    """
    z2g = (-gamma) * jnp.sum(z * z, axis=-1, keepdims=True)            # [rows, 1]  f32 (VPU+XLU)
    zc = jax.lax.dot_general(                                          # [rows, n_pad]  MXU
        z.astype(compute_dtype), centers_scaled,
        (((1,), (1,)), ((), ())), preferred_element_type=jnp.float32)
    e = jnp.minimum(zc + z2g + c2g_row, 0.0)                           # adds only; clamp exponent
    if exp_bf16:
        gram = jnp.exp(e.astype(jnp.bfloat16))                         # bf16 EUP, feeds MXU as-is
    else:
        gram = jnp.exp(e).astype(compute_dtype)                        # f32 EUP (v5e / fp32 path)
    return jnp.dot(gram, w, preferred_element_type=jnp.float32)        # [rows, F_out]  MXU, f32 acc


def _stack_kernel(*refs, gammas, compute_dtype, exp_bf16, store_all):
    """Fused forward over a stack of RBF layers for one tile of rows; activations stay in VMEM."""
    num_layers = len(gammas)
    x_ref = refs[0]
    cs_refs = refs[1:1 + num_layers]
    c2g_refs = refs[1 + num_layers:1 + 2 * num_layers]
    w_refs = refs[1 + 2 * num_layers:1 + 3 * num_layers]
    out_refs = refs[1 + 3 * num_layers:]

    z = x_ref[...]                                                     # [tile_rows, F_in0] f32
    for l in range(num_layers):
        z = _rbf_apply(z, cs_refs[l][...], c2g_refs[l][...], w_refs[l][...],
                       gammas[l], compute_dtype, exp_bf16)
        if store_all:
            out_refs[l][...] = z                                       # lane-dense full-block store
    if not store_all:
        out_refs[0][...] = z                                           # final layer only


def _stack_forward(x, cs_list, c2g_list, w_list, gammas, *, tile_rows,
                   compute_dtype, exp_bf16, store_all, vmem_limit):
    """Run the fused layer stack over `x` rows, tiled ("parallel") over row blocks."""
    rows, f_in0 = x.shape
    f_outs = [int(w.shape[1]) for w in w_list]
    rows_pad = _round_up(max(rows, tile_rows), tile_rows)
    if rows_pad != rows:
        x = jnp.zeros((rows_pad, f_in0), x.dtype).at[:rows].set(x)
    grid = (rows_pad // tile_rows,)

    in_specs = [pl.BlockSpec((tile_rows, f_in0), lambda i: (i, 0))]
    # Constant-index operands: single-buffer (their index_map never changes).
    for arr in list(cs_list) + list(c2g_list) + list(w_list):
        in_specs.append(pl.BlockSpec(arr.shape, lambda i: (0, 0),
                                     pipeline_mode=pl.Buffered(1)))

    if store_all:
        out_shape = tuple(jax.ShapeDtypeStruct((rows_pad, fo), jnp.float32) for fo in f_outs)
        out_specs = tuple(pl.BlockSpec((tile_rows, fo), lambda i: (i, 0)) for fo in f_outs)
    else:
        out_shape = (jax.ShapeDtypeStruct((rows_pad, f_outs[-1]), jnp.float32),)
        out_specs = (pl.BlockSpec((tile_rows, f_outs[-1]), lambda i: (i, 0)),)

    kernel = functools.partial(_stack_kernel, gammas=tuple(gammas),
                               compute_dtype=compute_dtype,
                               exp_bf16=exp_bf16, store_all=store_all)
    outs = pl.pallas_call(
        kernel,
        out_shape=out_shape,
        grid=grid,
        in_specs=in_specs,
        out_specs=out_specs,
        compiler_params=pltpu.CompilerParams(
            dimension_semantics=("parallel",),
            vmem_limit_bytes=int(vmem_limit)),
    )(x, *cs_list, *c2g_list, *w_list)
    return tuple(o[:rows] for o in outs)


def deep_kernel_regression(X, inputs, weights, gammas, *, tile_m=None,
                           use_bf16=True, retain_layer_outputs=True):
    """Forward pass of DeepKernelRegression.

    X       : [M, D0] query points
    inputs  : [N, D0] anchor points indexing the first RKHS's subspace
    weights : list of [N, 1, ranges[l]] arrays (one per kernel layer)
    gammas  : list of RBF bandwidths (gamma = 1 / (2 * lengthscale^2))

    Returns (final_output [M, ranges[-1]], list of per-layer outputs).
    """
    X = jnp.asarray(X, jnp.float32)
    inputs = jnp.asarray(inputs, jnp.float32)
    M, D0 = X.shape
    N, d0b = inputs.shape
    assert d0b == D0, "X and inputs must share the input dimension"
    num_layers = len(weights)
    assert len(gammas) == num_layers
    gammas = tuple(float(g) for g in gammas)

    ranges, w2d = [], []
    for w in weights:
        w = jnp.asarray(w, jnp.float32)
        assert w.shape[0] == N and w.shape[1] == 1
        ranges.append(int(w.shape[2]))
        w2d.append(jnp.squeeze(w, axis=1))                             # [N, 1, R] -> [N, R]

    vmem_cap, kind = _tpu_resources()
    vmem_limit = (vmem_cap * 3) // 4                                   # ~48 MiB v7x / ~96 MiB v5e,v6e
    small_vmem = vmem_cap <= 64 * 1024 * 1024
    compute_dtype = jnp.bfloat16 if use_bf16 else jnp.float32
    exp_bf16 = bool(use_bf16 and (("v6" in kind) or ("v7" in kind)))   # bf16 EUP only on v6e/v7x

    # Per-layer padded widths (multiples of 128 -> lane-dense). Zero padding is exact: padded
    # feature columns add 0 to every squared distance, and padded anchor rows carry all-zero
    # weight rows so they contribute 0 to every Gram @ W product.
    d_ins = [D0] + ranges[:-1]
    f_ins = [_round_up(d, _LANE) for d in d_ins]
    f_outs = [_round_up(r, _LANE) for r in ranges]
    n_pad = _round_up(N, _LANE)                                        # lane-dense Gram columns

    # Row-tile: target >= 4 blocks (>= 2 for tiny M) so the "parallel" axis shards across both
    # TensorCores on v7x; cap the tile where VMEM is 64 MiB/TC.
    tile_cap = 256 if small_vmem else 512
    if tile_m is None:
        target_blocks = 4 if M >= 32 else 2
        tile_m = min(tile_cap, max(8, _round_up(pl.cdiv(M, target_blocks), 8)))
    tile_m = max(8, _round_up(int(tile_m), 8))

    xp = jnp.zeros((M, f_ins[0]), jnp.float32).at[:, :D0].set(X)
    wp = [jnp.zeros((n_pad, f_outs[l]), jnp.float32)
          .at[:N, :ranges[l]].set(w2d[l]).astype(compute_dtype)
          for l in range(num_layers)]

    # --- Anchors propagation: per-layer, row-tiled (scales in N, unlike a single [N, N] Gram).
    tile_n = min(tile_cap, max(8, _round_up(pl.cdiv(n_pad, 2), 8)))
    centers = jnp.zeros((n_pad, f_ins[0]), jnp.float32).at[:N, :D0].set(inputs)
    cs_list, c2g_list = [], []
    for l in range(num_layers):
        g = gammas[l]
        cs_l = ((2.0 * g) * centers).astype(compute_dtype)             # [n_pad, f_ins[l]]
        c2g_l = ((-g) * jnp.sum(centers * centers, axis=-1))[None, :]  # [1, n_pad] f32
        cs_list.append(cs_l)
        c2g_list.append(c2g_l)
        if l + 1 < num_layers:                                         # c_{l+1} = f_l(c_l)
            (centers,) = _stack_forward(
                centers, [cs_l], [c2g_l], [wp[l]], (g,),
                tile_rows=tile_n, compute_dtype=compute_dtype, exp_bf16=exp_bf16,
                store_all=False, vmem_limit=vmem_limit)

    # --- Fused forward over all layers, tiled over query rows; activations resident in VMEM.
    outs = _stack_forward(
        xp, cs_list, c2g_list, wp, gammas,
        tile_rows=tile_m, compute_dtype=compute_dtype, exp_bf16=exp_bf16,
        store_all=retain_layer_outputs, vmem_limit=vmem_limit)

    if retain_layer_outputs:
        layer_outputs = [outs[l][:, :ranges[l]] for l in range(num_layers)]
        return layer_outputs[-1], layer_outputs
    return outs[0][:, :ranges[-1]], []


# ----------------------------- pure-JAX fp32 reference -----------------------------
def _reference_layer(x, centers, w2d, gamma):
    sq = (jnp.sum(x * x, -1, keepdims=True)
          + jnp.sum(centers * centers, -1)[None, :]
          - 2.0 * jnp.dot(x, centers.T, precision=jax.lax.Precision.HIGHEST))
    return jnp.dot(jnp.exp(-gamma * jnp.maximum(sq, 0.0)), w2d,
                   precision=jax.lax.Precision.HIGHEST)


def _reference_forward(X, inputs, weights, gammas):
    out, anchors = jnp.asarray(X, jnp.float32), jnp.asarray(inputs, jnp.float32)
    louts = []
    for i, (w, g) in enumerate(zip(weights, gammas)):
        w2d = jnp.squeeze(jnp.asarray(w, jnp.float32), axis=1)
        new_out = _reference_layer(out, anchors, w2d, g)
        if i + 1 < len(weights):
            anchors = _reference_layer(anchors, anchors, w2d, g)
        out = new_out
        louts.append(out)
    return out, louts


def _rel_fro(a, b):
    return float(jnp.linalg.norm(a - b) / jnp.linalg.norm(b))


if __name__ == "__main__":
    key = jax.random.PRNGKey(0)
    k1, k2, k3, k4 = jax.random.split(key, 4)

    # Small, module-consistent shapes: N anchors, D0 input dim, two RKHS layers whose padded
    # feature widths differ (256 vs 128) to exercise the per-layer-width path.
    N, D0 = 8, 4
    ranges = [150, 8]
    M = 50                                                   # ragged on purpose (not a multiple of 8)

    inputs = jax.random.normal(k1, (N, D0), jnp.float32)     # self._inputs
    X = jax.random.normal(k2, (M, D0), jnp.float32)          # forward() argument
    W1 = jax.random.normal(k3, (N, 1, ranges[0]), jnp.float32)   # torch.randn([N,1,ranges[0]])
    W2 = jax.random.normal(k4, (N, 1, ranges[1]), jnp.float32)   # torch.randn([N,1,ranges[1]])
    weights = [W1, W2]
    gammas = [0.5, 0.02]                                     # per-layer RBF bandwidths

    ref_out, ref_layers = _reference_forward(X, inputs, weights, gammas)

    # (1) fp32-MXU path, explicit small tile (multi-block grid). Tight tolerance so indexing /
    #     layout bugs at the percent level cannot hide.
    out32, louts32 = deep_kernel_regression(X, inputs, weights, gammas,
                                            tile_m=16, use_bf16=False)
    out32 = jax.block_until_ready(out32)
    assert out32.shape == (M, ranges[-1])
    assert len(louts32) == len(weights)
    assert _rel_fro(out32, ref_out) < 1e-4, "fp32 Pallas output mismatch vs JAX reference"
    for lo, lr in zip(louts32, ref_layers):
        assert lo.shape == lr.shape
        assert _rel_fro(lo, lr) < 1e-4, "fp32 per-layer output mismatch vs JAX reference"

    # (2) default bf16-MXU path (performance path; bf16 exp on v6e/v7x). bf16 rounding compounds
    #     through the exp of a two-layer composition -> expect a few percent aggregate error.
    out16, louts16 = deep_kernel_regression(X, inputs, weights, gammas, use_bf16=True)
    out16 = jax.block_until_ready(out16)
    assert out16.shape == (M, ranges[-1])
    assert len(louts16) == len(weights)
    assert _rel_fro(out16, ref_out) < 1e-1, "bf16 Pallas output too far from fp32 reference"

    # (3) retain_layer_outputs=False: only the final layer is written back to HBM.
    out_nr, louts_nr = deep_kernel_regression(X, inputs, weights, gammas,
                                              use_bf16=True, retain_layer_outputs=False)
    out_nr = jax.block_until_ready(out_nr)
    assert out_nr.shape == (M, ranges[-1])
    assert louts_nr == []
    assert _rel_fro(out_nr, ref_out) < 1e-1, "retain=False output too far from fp32 reference"

    print("KERNEL_OK")
</pallas_src>

<mosaic_0001>
module attributes {stable_mosaic.version = 11 : i64} {
  func.func @_stack_kernel(%arg0: i32, %arg1: memref<64x128xf32, #tpu.memory_space<vmem>>, %arg2: memref<128x128xf32, #tpu.memory_space<vmem>>, %arg3: memref<1x128xf32, #tpu.memory_space<vmem>>, %arg4: memref<128x256xf32, #tpu.memory_space<vmem>>, %arg5: memref<64x256xf32, #tpu.memory_space<vmem>>) attributes {dimension_semantics = [#tpu.dimension_semantics<parallel>], iteration_bounds = array<i64: 2>, scalar_prefetch = 0 : i64, scratch_operands = 0 : i64, tpu.core_type = #tpu.core_type<tc>, window_params = [{transform_indices = @transform_0, window_bounds = array<i64: 64, 128>}, {pipeline_mode = #tpu.pipeline_mode<synchronous>, transform_indices = @transform_1, window_bounds = array<i64: 128, 128>}, {pipeline_mode = #tpu.pipeline_mode<synchronous>, transform_indices = @transform_2, window_bounds = array<i64: 1, 128>}, {pipeline_mode = #tpu.pipeline_mode<synchronous>, transform_indices = @transform_3, window_bounds = array<i64: 128, 256>}, {transform_indices = @transform_4, window_bounds = array<i64: 64, 256>}]} {
    %c0 = arith.constant 0 : index
    %c0_0 = arith.constant 0 : index
    %0 = vector.load %arg1[%c0, %c0_0] : memref<64x128xf32, #tpu.memory_space<vmem>>, vector<64x128xf32>
    %c0_1 = arith.constant 0 : index
    %c0_2 = arith.constant 0 : index
    %1 = vector.load %arg2[%c0_1, %c0_2] : memref<128x128xf32, #tpu.memory_space<vmem>>, vector<128x128xf32>
    %c0_3 = arith.constant 0 : index
    %c0_4 = arith.constant 0 : index
    %2 = vector.load %arg3[%c0_3, %c0_4] : memref<1x128xf32, #tpu.memory_space<vmem>>, vector<1x128xf32>
    %c0_5 = arith.constant 0 : index
    %c0_6 = arith.constant 0 : index
    %3 = vector.load %arg4[%c0_5, %c0_6] : memref<128x256xf32, #tpu.memory_space<vmem>>, vector<128x256xf32>
    %4 = arith.mulf %0, %0 : vector<64x128xf32>
    %cst = arith.constant dense<0.000000e+00> : vector<64xf32>
    %5 = vector.multi_reduction <add>, %4, %cst [1] : vector<64x128xf32> to vector<64xf32>
    %6 = vector.shape_cast %5 : vector<64xf32> to vector<64x1xf32>
    %cst_7 = arith.constant -5.000000e-01 : f32
    %7 = vector.broadcast %cst_7 : f32 to vector<64x1xf32>
    %8 = arith.mulf %7, %6 : vector<64x1xf32>
    %cst_8 = arith.constant dense<0.000000e+00> : vector<64x128xf32>
    %9 = tpu.matmul %0, %1, %cst_8 {dimension_numbers = #tpu.dot_dimension_numbers<[1], [1], [0], [0], [0, 0, 1, 0], [], []>} : vector<64x128xf32>, vector<128x128xf32>, vector<64x128xf32> -> vector<64x128xf32>
    %10 = vector.broadcast %8 : vector<64x1xf32> to vector<64x128xf32>
    %11 = arith.addf %9, %10 : vector<64x128xf32>
    %12 = vector.broadcast %2 : vector<1x128xf32> to vector<64x128xf32>
    %13 = arith.addf %11, %12 : vector<64x128xf32>
    %cst_9 = arith.constant 0.000000e+00 : f32
    %14 = vector.broadcast %cst_9 : f32 to vector<64x128xf32>
    %15 = arith.minimumf %13, %14 : vector<64x128xf32>
    %16 = math.exp %15 : vector<64x128xf32>
    %cst_10 = arith.constant dense<0.000000e+00> : vector<64x256xf32>
    %17 = tpu.matmul %16, %3, %cst_10 {dimension_numbers = #tpu.dot_dimension_numbers<[1], [0], [0], [1], [0, 0, 1, 1], [], []>} : vector<64x128xf32>, vector<128x256xf32>, vector<64x256xf32> -> vector<64x256xf32>
    %c0_11 = arith.constant 0 : index
    %c0_12 = arith.constant 0 : index
    %18 = vector.load %arg5[%c0_11, %c0_12] : memref<64x256xf32, #tpu.memory_space<vmem>>, vector<64x256xf32>
    tpu.vector_store %arg5[%c0_11, %c0_12], %17 {strides = array<i32>} : memref<64x256xf32, #tpu.memory_space<vmem>>, vector<64x256xf32>,
    return
  }
  func.func @transform_0(%arg0: i32) -> (i32, i32) {
    %c0_i32 = arith.constant 0 : i32
    %c0_i32_0 = arith.constant 0 : i32
    return %arg0, %c0_i32 : i32, i32
  }
  func.func @transform_1(%arg0: i32) -> (i32, i32) {
    %c0_i32 = arith.constant 0 : i32
    %c0_i32_0 = arith.constant 0 : i32
    %c0_i32_1 = arith.constant 0 : i32
    return %c0_i32, %c0_i32_0 : i32, i32
  }
  func.func @transform_2(%arg0: i32) -> (i32, i32) {
    %c0_i32 = arith.constant 0 : i32
    %c0_i32_0 = arith.constant 0 : i32
    %c0_i32_1 = arith.constant 0 : i32
    return %c0_i32, %c0_i32_0 : i32, i32
  }
  func.func @transform_3(%arg0: i32) -> (i32, i32) {
    %c0_i32 = arith.constant 0 : i32
    %c0_i32_0 = arith.constant 0 : i32
    %c0_i32_1 = arith.constant 0 : i32
    return %c0_i32, %c0_i32_0 : i32, i32
  }
  func.func @transform_4(%arg0: i32) -> (i32, i32) {
    %c0_i32 = arith.constant 0 : i32
    %c0_i32_0 = arith.constant 0 : i32
    return %arg0, %c0_i32 : i32, i32
  }
}

</mosaic_0001>

<bundles_post_ra>
// kernel: tpu_custom_call.1
= control target key start
LH: loop header
LB: loop body
LE: loop exit
PB: predicated region body
PF: predicated region fallthrough
CT: control target
= control target key end

     0   :  { %9 = vsyncpa [#allocation3], 0  ;;  %s1450_s0 = inlined_call_operand.hbm [shape: f32[128,128], index: 0, kind: input, shape index: {}]   ;;  %s1451_s1 = inlined_call_operand.hbm [shape: f32[128,128], index: 1, kind: input, shape index: {}]   ;;  %s1452_s2 = inlined_call_operand.vmem [shape: f32[1,128], index: 2, kind: input, shape index: {}]   ;;  %s1453_s3 = inlined_call_operand.hbm [shape: f32[128,256], index: 3, kind: input, shape index: {}]   ;;  %s1454_s4 = inlined_call_operand.hbm [shape: f32[128,256], index: 4, kind: output, shape index: {}]  }
   0x1   :  { %11 = vsyncpa [#allocation3 + $0x1], 0 }
   0x2   :  { %12 = vsyncpa [#allocation6], 0 }
   0x3   :  { %13 = vsyncpa [#allocation4], 0 }
   0x4   :  { %15 = vsyncpa [#allocation4 + $0x1], 0  ;;  %s1154_s15 = smov 0   ;;  %s1156_s16 = smov 0  }
   0x5   :  { %s1158_s17 = smov 0   ;;  %s1160_s18 = smov 0  }
   0x6 LB: > { %s1175_s19 = sadd.s32 4294967295, %s1116_s18   ;;  %s715_s20 = sadd.s32 4294967294, %s1116_s18   ;;  %s1116_s18 = sphi %s1160_s18, %s1474_s18   ;;  %s1112_s17 = sphi %s1158_s17, %s1473_s17   ;;  %s1108_s16 = sphi %s1156_s16, %s1472_s16   ;;  %s1104_s15 = sphi %s1154_s15, %s1471_s15  }
   0x7   : > { %p41_p0 = scmp.ne.s32.totalorder %s1108_s16, %s1104_s15  ;;  %p1455_p1 = scmp.eq.s32.totalorder %s1175_s19, 0 }
   0x8   : > { %p134_p3 = scmp.eq.s32.totalorder %s715_s20, 1  ;;  %p716_p5 = scmp.ge.s32.totalorder %s1116_s18, 1 }
   0x9   : > { %p1184_p4 = por %p1455_p1, %p41_p0  ;;  %p141_p7 = scmp.lt.s32.totalorder %s1116_s18, 3 }
   0xa   : > { %p1189_p6 = por %p134_p3, %p41_p0  ;;  %s1118_s24 = smov [#allocation5]  }
   0xb   : > { %s1458_s21 = scalar_select %p1184_p4, 1, 0 }
   0xc   : > { %s1459_s22 = scalar_select %p1189_p6, 1, 0 }
   0xd   : > { %p1194_p8 = pnand %p716_p5, %p141_p7  ;;  %s153_s25 = sshll.u32 %s1118_s24, 4  ;;  %s1198_s25 = int_to_ptr.vmem [resolvable:$true] %s153_s25 }
   0xe   : > { %s1119_s27 = smov [#allocation7]   ;;  %s960_s5 = scalar_lea.hbm %s1451_s1, 2048 }
   0xf   : > { %p882_p9 = pneg %p1194_p8  ;;  %s169_s28 = sshll.u32 %s1119_s27, 4  ;;  %s1209_s28 = int_to_ptr.vmem [resolvable:$true] %s169_s28 }
  0x10   : > { %p961_p12 = scmp.ne.s32.totalorder %s1451_s1, %s960_s5  ;;  %p967_p5 = scmp.lt.u32.totalorder %s960_s5, %s1451_s1 }
  0x11   : > { %p1205_p11 = pnand %p882_p9, %p1455_p1 }
  0x13   : > { %p962_p13 = pneg %p1205_p11 }
  0x15   : > { %p963_p0 = pnand %p962_p13, %p961_p12 }
  0x17   : > { %p964_p3 = pneg %p963_p0 }
  0x19   : > { %p969_p7 = pnand %p967_p5, %p964_p3 }
  0x1b   : > { %972 = shalt.err (!%p969_p7)
}
  0x1c   : > { %s973_s10 = scalar_lea.vmem %s1198_s25, 2048  ;;  %p981_p2 = scmp.lt.s32.totalorder %s1198_s25, %s1198_s25 }
  0x1d   : > { %p974_p9 = scmp.ne.s32.totalorder %s1198_s25, %s973_s10  ;;  %p982_p12 = scmp.lt.s32.totalorder %s973_s10, %s973_s10 }
  0x1f   : > { %p976_p10 = pnand %p974_p9, %p962_p13  ;;  %p983_p0 = por %p982_p12, %p981_p2 }
  0x21   : > { %p977_p1 = pneg %p976_p10 }
  0x23   : > { %p984_p6 = pnand %p983_p0, %p977_p1 }
  0x25   : > { %987 = shalt.err (!%p984_p6)
}
  0x26   : > { %s1120_s11 = smov 128   ;;  %s1121_s12 = smov 8  }
  0x27   : > { %885 = dma.hbm_to_vmem [thread:$0]  (!%p1205_p11), %s1451_s1, 2048, %s1198_s25, [#allocation6], %s1120_s11, %s1120_s11, %s1121_s12  }
  0x28   : > { %s988_s27 = scalar_lea.hbm %s1453_s3, 4096 }
  0x29   : > { %p989_p1 = scmp.ne.s32.totalorder %s1453_s3, %s988_s27  ;;  %p995_p10 = scmp.lt.u32.totalorder %s988_s27, %s1453_s3 }
  0x2b   : > { %p991_p2 = pnand %p989_p1, %p962_p13 }
  0x2d   : > { %p992_p6 = pneg %p991_p2 }
  0x2f   : > { %p997_p3 = pnand %p995_p10, %p992_p6 }
  0x31   : > { %1000 = shalt.err (!%p997_p3)
}
  0x32   : > { %s1001_s25 = scalar_lea.vmem %s1209_s28, 4096  ;;  %p1009_p12 = scmp.lt.s32.totalorder %s1209_s28, %s1209_s28 }
  0x33   : > { %p1002_p5 = scmp.ne.s32.totalorder %s1209_s28, %s1001_s25  ;;  %p1010_p0 = scmp.lt.s32.totalorder %s1001_s25, %s1001_s25 }
  0x35   : > { %p1004_p7 = pnand %p1002_p5, %p962_p13  ;;  %p1011_p1 = por %p1010_p0, %p1009_p12 }
  0x37   : > { %p1005_p9 = pneg %p1004_p7 }
  0x39   : > { %p1012_p2 = pnand %p1011_p1, %p1005_p9 }
  0x3b   : > { %1015 = shalt.err (!%p1012_p2)
}
  0x3c   : > { %s1122_s7 = smov 256   ;;  %s1123_s8 = smov 16  }
  0x3d   : > { %888 = dma.hbm_to_vmem [thread:$0]  (!%p1205_p11), %s1453_s3, 4096, %s1209_s28, [#allocation6], %s1122_s7, %s1122_s7, %s1123_s8  }
  0x3e   : > { %s1267_s13 = sadd.s32 1, %s1116_s18   ;;  %s28_s20 = sadd.s32 1, %s1112_s17 }
  0x3f   : > { %s25_s14 = ssub.s32 %s1116_s18, %s1267_s13  ;;  %p35_p6 = scmp.ne.s32.totalorder %s1112_s17, %s1108_s16 }
  0x40   : > { %p26_p13 = scmp.eq.s32.totalorder %s25_s14, 0  ;;  %p36_p10 = scmp.eq.s32.totalorder %s1116_s18, 0 }
  0x41   : > { %p1462_p5 = scmp.eq.s32.totalorder %s1175_s19, 1  ;;  %p899_p9 = scmp.lt.s32.totalorder %s1116_s18, 2 }
  0x42   : > { %s1276_s24 = scalar_select %p26_p13, %s1112_s17, %s28_s20  }
  0x43   : > { %p37_p3 = por %p36_p10, %p35_p6  ;;  %p1280_p7 = por %p1462_p5, %p35_p6 }
  0x44   : > { %s183_s26 = sand.u32 1, %s1112_s17   ;;  %s735_s28 = sshll.u32 %s1116_s18, 10 }
  0x45   : > { %s1463_s27 = scalar_select %p1280_p7, 1, 0 }
  0x46   : > { %s720_s29 = sshll.u32 %s183_s26, 6  ;;  %s1290_s6 = scalar_lea.hbm %s1450_s0, %s735_s28 }
  0x47   : > { %s187_s25 = scalar_lea.vmem [#allocation2], %s720_s29  ;;  %p1294_p11 = pnand %p899_p9, %p37_p3 }
  0x48   : > { %s194_s7 = sshll.u32 %s187_s25, 4  ;;  %s1298_s9 = scalar_lea.sflag [#allocation3], %s183_s26  ;;  %s1292_s7 = int_to_ptr.vmem [resolvable:$true] %s194_s7 }
  0x49   : > { %s1016_s10 = scalar_lea.hbm %s1290_s6, 1024  ;;  %p1018_p0 = pneg %p1294_p11 }
  0x4a   : > { %p1017_p12 = scmp.ne.s32.totalorder %s1290_s6, %s1016_s10  ;;  %s1021_s29 = scalar_lea.hbm %s1450_s0, 2048 }
  0x4b   : > { %p1022_p13 = scmp.lt.u32.totalorder %s1290_s6, %s1450_s0  ;;  %p1023_p6 = scmp.lt.u32.totalorder %s1021_s29, %s1016_s10 }
  0x4c   : > { %p1019_p1 = pnand %p1018_p0, %p1017_p12  ;;  %p1025_p3 = scmp.lt.u32.totalorder %s1016_s10, %s1290_s6 }
  0x4d   : > { %p1024_p10 = por %p1023_p6, %p1022_p13 }
  0x4e   : > { %p1020_p2 = pneg %p1019_p1 }
  0x4f   : > { %p1026_p5 = por %p1025_p3, %p1024_p10 }
  0x51   : > { %p1027_p9 = pnand %p1026_p5, %p1020_p2 }
  0x53   : > { %1030 = shalt.err (!%p1027_p9)
}
  0x54   : > { %s1031_s26 = scalar_lea.vmem %s1292_s7, 1024  ;;  %s1124_s5 = smov [#allocation2]  }
  0x55   : > { %p1032_p12 = scmp.ne.s32.totalorder %s1292_s7, %s1031_s26  ;;  %s1036_s25 = sshll.u32 %s1124_s5, 4  ;;  %s1037_s25 = int_to_ptr.vmem [resolvable:$false] %s1036_s25 }
  0x56   : > { %s1038_s14 = scalar_lea.vmem %s1037_s25, 2048  ;;  %p1039_p4 = scmp.lt.s32.totalorder %s1292_s7, %s1037_s25 }
  0x57   : > { %p1034_p1 = pnand %p1032_p12, %p1018_p0  ;;  %p1040_p13 = scmp.lt.s32.totalorder %s1038_s14, %s1031_s26 }
  0x59   : > { %p1035_p7 = pneg %p1034_p1  ;;  %p1041_p6 = por %p1040_p13, %p1039_p4 }
  0x5b   : > { %p1042_p10 = pnand %p1041_p6, %p1035_p7 }
  0x5d   : > { %1045 = shalt.err (!%p1042_p10)
}
  0x5e   : > { %892 = dma.hbm_to_vmem [thread:$0]  (!%p1294_p11), %s1290_s6, 1024, %s1292_s7, %s1298_s9, %s1120_s11, %s1120_s11, %s1121_s12  }
  0x5f   : > { %206 = sbr.rel (%p1194_p8) target bundleno = 661 (0x295), region = 36  ;;  %s1332_s10 = sand.u32 (!%p1194_p8), 1, %s1108_s16  }
  0x60   : > { %s724_s20 = sshll.u32 (!%p1194_p8), %s1332_s10, 6  ;;  %s209_s29 = scalar_lea.sflag (!%p1194_p8), [#allocation3], %s1332_s10 }
  0x61   : > { %s1336_s28 = scalar_lea.vmem (!%p1194_p8), [#allocation2], %s724_s20  ;;  %p1465_p4 = scmp.ne.s32.totalorder (!%p1194_p8), %s1458_s21, 0 }
  0x66   : > { %1091 = dma.done.wait (%p1465_p4), %s209_s29, 1024  }
  0x67   : > { %1093 = vsyncadd (%p1465_p4), %s209_s29, 4294966272  ;;  %p1466_p7 = scmp.eq.s32.totalorder %s1175_s19, 0 }
  0x69   : > { %1095 = dma.done.wait (%p1466_p7), [#allocation6], 6144   ;;  %p1467_p8 = pmov %p1466_p7 }
  0x6a   : > { %v255_v0 = vld [vmem:[#allocation5] sm:$0xff]  ;;  %v256_v1 = vld [vmem:[#allocation5 + $0x8] sm:$0xff]  ;;  %v257_v2 = vld [vmem:[#allocation5 + $0x10] sm:$0xff]  ;;  %s727_s11 = sshll.u32 %s1332_s10, 7  ;;  %s737_s6 = sshll.u32 %s1175_s19, 11 }
  0x6b   : > { %1097 = vsyncadd (%p1467_p8), [#allocation6], 4294961152  ;;  %v806_v3 = vpack.c.bf16 %v256_v1, %v255_v0  ;;  %v258_v4 = vld [vmem:[#allocation5 + $0x18] sm:$0xff]  ;;  %v247_v6 = vld [vmem:[%s1336_s28] sm:$0xff]  ;;  %s1381_s12 = scalar_lea.vmem [#allocation8], %s727_s11  ;;  %s1402_s30 = scalar_lea.hbm %s1454_s4, %s737_s6 }
  0x6c   : > { %v810_v5 = vpack.c.bf16 %v258_v4, %v257_v2  ;;  %v259_v7 = vld [vmem:[#allocation5 + $0x20] sm:$0xff]  ;;  %v260_v8 = vld [vmem:[#allocation5 + $0x28] sm:$0xff]  ;;  %794 = vmatprep.mubr.f32.mxu0 %v247_v6  ;;  %v1348_v9 = vld [vmem:[%s1336_s28 + $0x10] sm:$0xff]  ;;  %v304_v10 = vmul.f32 %v247_v6, %v247_v6  ;;  %s623_s7 = sshll.u32 %s1381_s12, 4  ;;  %s609_s26 = scalar_lea.sflag [#allocation4], %s1332_s10  ;;  %s1404_s7 = int_to_ptr.vmem [resolvable:$true] %s623_s7 }
  0x6d   : > { %807 = vmatprep.subr.bf16.mxu0 %v806_v3  ;;  %v1351_v11 = vld [vmem:[%s1336_s28 + $0x8] sm:$0xff]  ;;  %v1354_v12 = vld [vmem:[%s1336_s28 + $0x18] sm:$0xff]  ;;  %v306_v13 = vmul.f32 %v1348_v9, %v1348_v9  ;;  %v272_v17 = vld [vmem:[#allocation7] sm:$0xff]  ;;  %v814_v18 = vpack.c.bf16 %v260_v8, %v259_v7  ;;  %s1046_s19 = scalar_lea.vmem %s1404_s7, 2048  ;;  %p1468_p0 = scmp.ne.s32.totalorder %s1463_s27, 0 }
  0x6e   : > { %809 = vmatpush3.bf16.xpose.msra.mxu0 %v806_v3  ;;  %312 = vadd.xlane.f32.xlu0 %v304_v10  ;;  %v305_v14 = vmul.f32 %v1351_v11, %v1351_v11  ;;  %v273_v15 = vld [vmem:[#allocation7 + $0x8] sm:$0xff]  ;;  %v275_v16 = vld [vmem:[#allocation7 + $0x18] sm:$0xff]  ;;  %v307_v19 = vmul.f32 %v1354_v12, %v1354_v12  ;;  %v274_v21 = vld [vmem:[#allocation7 + $0x10] sm:$0xff]  ;;  %p1047_p11 = scmp.ne.s32.totalorder %s1404_s7, %s1046_s19  ;;  %s1126_s5 = smov [#allocation8]  }
  0x6f   : > { %811 = vmatprep.subr.bf16.mxu0 %v810_v5  ;;  %316 = vadd.xlane.f32.xlu1 %v306_v13  ;;  %v838_v20 = vpack.c.bf16 %v275_v16, %v273_v15  ;;  %v277_v22 = vld [vmem:[#allocation7 + $0x28] sm:$0xff]  ;;  %v279_v23 = vld [vmem:[#allocation7 + $0x38] sm:$0xff]  ;;  %v840_v24 = vpack.c.bf16 %v274_v21, %v272_v17  ;;  %v251_v25 = vld [vmem:[%s1336_s28 + $0x20] sm:$0xff]  ;;  %s1050_s25 = sshll.u32 %s1126_s5, 4  ;;  %s1051_s25 = int_to_ptr.vmem [resolvable:$false] %s1050_s25 }
  0x70   : > { %v842_v26 = vpack.c.bf16 %v279_v23, %v277_v22  ;;  %v276_v27 = vld [vmem:[#allocation7 + $0x20] sm:$0xff]  ;;  %v278_v28 = vld [vmem:[#allocation7 + $0x30] sm:$0xff]  ;;  %v252_v29 = vld [vmem:[%s1336_s28 + $0x28] sm:$0xff]  ;;  %v308_v30 = vmul.f32 %v251_v25, %v251_v25  ;;  %p1048_p2 = pnand %p1047_p11, %p1468_p0  ;;  %s1052_s14 = scalar_lea.vmem %s1051_s25, 4096 }
  0x71   : > { %839 = vmatprep.subr.bf16.mxu1 %v838_v20  ;;  %v309_v31 = vmul.f32 %v252_v29, %v252_v29  ;;  %v261_v32 = vld [vmem:[#allocation5 + $0x30] sm:$0xff]  ;;  %v262_v33 = vld [vmem:[#allocation5 + $0x38] sm:$0xff]  ;;  %v844_v34 = vpack.c.bf16 %v278_v28, %v276_v27  ;;  %v263_v40 = vld [vmem:[#allocation5 + $0x40] sm:$0xff]  ;;  %p1053_p5 = scmp.lt.s32.totalorder %s1404_s7, %s1051_s25  ;;  %p1054_p9 = scmp.lt.s32.totalorder %s1052_s14, %s1046_s19 }
  0x72   : > { %314 = vadd.xlane.f32.xlu0 %v305_v14  ;;  %841 = vmatpush1.bf16.msra.mxu1 %v840_v24  ;;  %v253_v35 = vld [vmem:[%s1336_s28 + $0x30] sm:$0xff]  ;;  %v254_v36 = vld [vmem:[%s1336_s28 + $0x38] sm:$0xff]  ;;  %v818_v38 = vpack.c.bf16 %v262_v33, %v261_v32  ;;  %v264_v41 = vld [vmem:[#allocation5 + $0x48] sm:$0xff]  ;;  %v1125_v24 = vmov 0.0   ;;  %p1049_p3 = pneg %p1048_p2 }
  0x73   : > { %318 = vadd.xlane.f32.xlu1 %v307_v19  ;;  %843 = vmatprep.subr.bf16.mxu1 %v842_v26  ;;  %v310_v37 = vmul.f32 %v253_v35, %v253_v35  ;;  %v311_v39 = vmul.f32 %v254_v36, %v254_v36  ;;  %v281_v42 = vld [vmem:[#allocation7 + $0x48] sm:$0xff]  ;;  %v283_v43 = vld [vmem:[#allocation7 + $0x58] sm:$0xff]  ;;  %v280_v44 = vld [vmem:[#allocation7 + $0x40] sm:$0xff]  ;;  %v822_v48 = vpack.c.bf16 %v264_v41, %v263_v40  ;;  %p1055_p12 = por %p1054_p9, %p1053_p5 }
  0x74   : > { %v846_v45 = vpack.c.bf16 %v283_v43, %v281_v42  ;;  %v282_v46 = vld [vmem:[#allocation7 + $0x50] sm:$0xff]  ;;  %v266_v50 = vld [vmem:[#allocation5 + $0x58] sm:$0xff]  ;;  %v267_v52 = vld [vmem:[#allocation5 + $0x60] sm:$0xff]  ;;  %543 = vmatprep.mubr.f32.mxu1 %v1125_v24 }
  0x75   : > { %v848_v47 = vpack.c.bf16 %v282_v46, %v280_v44  ;;  %v265_v49 = vld [vmem:[#allocation5 + $0x50] sm:$0xff]  ;;  %v268_v53 = vld [vmem:[#allocation5 + $0x68] sm:$0xff]  ;;  %v270_v56 = vld [vmem:[#allocation5 + $0x78] sm:$0xff]  ;;  %p1056_p1 = pnand %p1055_p12, %p1049_p3 }
  0x76   : > { %813 = vmatpush3.bf16.xpose.msra.mxu0 %v810_v5  ;;  %320 = vadd.xlane.f32.xlu0 %v308_v30  ;;  %v826_v51 = vpack.c.bf16 %v266_v50, %v265_v49  ;;  %v830_v54 = vpack.c.bf16 %v268_v53, %v267_v52  ;;  %v269_v55 = vld [vmem:[#allocation5 + $0x70] sm:$0xff]  ;;  %v285_v58 = vld [vmem:[#allocation7 + $0x68] sm:$0xff]  ;;  %v287_v59 = vld [vmem:[#allocation7 + $0x78] sm:$0xff] }
  0x77   : > { %815 = vmatprep.subr.bf16.mxu0 %v814_v18  ;;  %322 = vadd.xlane.f32.xlu1 %v309_v31  ;;  %v834_v57 = vpack.c.bf16 %v270_v56, %v269_v55  ;;  %v850_v60 = vpack.c.bf16 %v287_v59, %v285_v58  ;;  %v284_v61 = vld [vmem:[#allocation7 + $0x60] sm:$0xff]  ;;  %v286_v62 = vld [vmem:[#allocation7 + $0x70] sm:$0xff]  ;;  %v289_v0 = vld [vmem:[#allocation7 + $0x88] sm:$0xff] }
  0x78   : > { %845 = vmatpush1.bf16.msra.mxu1 %v844_v34  ;;  %v852_v63 = vpack.c.bf16 %v286_v62, %v284_v61  ;;  %v291_v1 = vld [vmem:[#allocation7 + $0x98] sm:$0xff]  ;;  %v288_v3 = vld [vmem:[#allocation7 + $0x80] sm:$0xff]  ;;  %v290_v4 = vld [vmem:[#allocation7 + $0x90] sm:$0xff] }
  0x79   : > { %847 = vmatprep.subr.bf16.mxu1 %v846_v45  ;;  %v854_v2 = vpack.c.bf16 %v291_v1, %v289_v0  ;;  %v856_v5 = vpack.c.bf16 %v290_v4, %v288_v3  ;;  %v293_v6 = vld [vmem:[#allocation7 + $0xa8] sm:$0xff]  ;;  %v295_v7 = vld [vmem:[#allocation7 + $0xb8] sm:$0xff]  ;;  %v294_v10 = vld [vmem:[#allocation7 + $0xb0] sm:$0xff] }
  0x7a   : > { %324 = vadd.xlane.f32.xlu0 %v310_v37  ;;  %v858_v8 = vpack.c.bf16 %v295_v7, %v293_v6  ;;  %v299_v13 = vld [vmem:[#allocation7 + $0xd8] sm:$0xff]  ;;  %v296_v15 = vld [vmem:[#allocation7 + $0xc0] sm:$0xff]  ;;  %v298_v16 = vld [vmem:[#allocation7 + $0xd0] sm:$0xff] }
  0x7b   : > { %326 = vadd.xlane.f32.xlu1 %v311_v39  ;;  %v864_v17 = vpack.c.bf16 %v298_v16, %v296_v15  ;;  %v303_v19 = vld [vmem:[#allocation7 + $0xf8] sm:$0xff]  ;;  %v300_v21 = vld [vmem:[#allocation7 + $0xe0] sm:$0xff]  ;;  %v302_v22 = vld [vmem:[#allocation7 + $0xf0] sm:$0xff] }
  0x7c   : > { %849 = vmatpush1.bf16.msra.mxu1 %v848_v47  ;;  %v868_v23 = vpack.c.bf16 %v302_v22, %v300_v21  ;;  %v728_v31 = vld [vmem:[%s1452_s2] ss:$0 sm:$0xff] }
  0x7d   : > { %851 = vmatprep.subr.bf16.mxu1 %v850_v60 }
  0x7e   : > { %817 = vmatpush3.bf16.xpose.msra.mxu0 %v814_v18  ;;  %v301_v18 = vld [vmem:[#allocation7 + $0xe8] sm:$0xff] }
  0x7f   : > { %819 = vmatprep.subr.bf16.mxu0 %v818_v38  ;;  %v866_v20 = vpack.c.bf16 %v303_v19, %v301_v18 }
  0x80   : > { %853 = vmatpush1.bf16.msra.mxu1 %v852_v63 }
  0x81   : > { %855 = vmatprep.subr.bf16.mxu1 %v854_v2 }
  0x84   : > { %857 = vmatpush1.bf16.msra.mxu1 %v856_v5 }
  0x85   : > { %859 = vmatprep.subr.bf16.mxu1 %v858_v8 }
  0x86   : > { %821 = vmatpush3.bf16.xpose.msra.mxu0 %v818_v38 }
  0x87   : > { %823 = vmatprep.subr.bf16.mxu0 %v822_v48 }
  0x8e   : > { %825 = vmatpush3.bf16.xpose.msra.mxu0 %v822_v48 }
  0x8f   : > { %827 = vmatprep.subr.bf16.mxu0 %v826_v51 }
  0x96   : > { %829 = vmatpush3.bf16.xpose.msra.mxu0 %v826_v51 }
  0x97   : > { %831 = vmatprep.subr.bf16.mxu0 %v830_v54 }
  0x9e   : > { %833 = vmatpush3.bf16.xpose.msra.mxu0 %v830_v54 }
  0x9f   : > { %835 = vmatprep.subr.bf16.mxu0 %v834_v57 }
  0xa6   : > { %837 = vmatpush3.bf16.xpose.msra.mxu0 %v834_v57 }
  0xad   : > { %795 = vmatmul.mubr.f32.vlgmr.msra.gmra.mrb[0].mxu0 %v1351_v11 }
  0xae   : > { %797 = vmatprep.mubr.f32.mxu0 %v1348_v9  ;;  %v292_v9 = vld [vmem:[#allocation7 + $0xa0] sm:$0xff] }
  0xaf   : > { %v860_v11 = vpack.c.bf16 %v294_v10, %v292_v9 }
  0xb1   : > { %798 = vmatmul.mubr.f32.gmra.mrb[2].mxu0 %v1354_v12  ;;  %861 = vmatpush1.bf16.msra.mxu1 %v860_v11  ;;  %v297_v12 = vld [vmem:[#allocation7 + $0xc8] sm:$0xff] }
  0xb2   : > { %800 = vmatprep.mubr.f32.mxu0 %v251_v25  ;;  %v862_v14 = vpack.c.bf16 %v299_v13, %v297_v12 }
  0xb4   : > { %863 = vmatprep.subr.bf16.mxu1 %v862_v14 }
  0xb5   : > { %801 = vmatmul.mubr.f32.gmra.mrb[4].mxu0 %v252_v29  ;;  %865 = vmatpush1.bf16.msra.mxu1 %v864_v17 }
  0xb6   : > { %803 = vmatprep.mubr.f32.mxu0 %v253_v35  ;;  %867 = vmatprep.subr.bf16.mxu1 %v866_v20 }
  0xb9   : > { %804 = vmatmul.mubr.f32.gmra.mrb[6].mxu0 %v254_v36  ;;  %869 = vmatpush1.bf16.msra.mxu1 %v868_v23 }
  0xfb   : > { %v313_v25 = vpop.xlane.xlu0 %312 }
  0xfc   : > { %v317_v26 = vpop.xlane.xlu1 %316  ;;  %v328_v29 = vmul.f32 -0.5, %v313_v25 }
  0xfd   : > { %v330_v36 = vmul.f32 -0.5, %v317_v26 }
  0xff   : > { %v315_v27 = vpop.xlane.xlu0 %314 }
 0x100   : > { %v329_v28 = vmul.f32 -0.5, %v315_v27  ;;  %v319_v30 = vpop.xlane.xlu1 %318 }
 0x101   : > { %v331_v37 = vmul.f32 -0.5, %v319_v30 }
 0x103   : > { %v321_v39 = vpop.xlane.xlu0 %320 }
 0x104   : > { %v323_v47 = vpop.xlane.xlu1 %322  ;;  %v332_v48 = vmul.f32 -0.5, %v321_v39 }
 0x105   : > { %v333_v53 = vmul.f32 -0.5, %v323_v47 }
 0x107   : > { %v325_v55 = vpop.xlane.xlu0 %324 }
 0x108   : > { %v334_v61 = vmul.f32 -0.5, %v325_v55  ;;  %v327_v2 = vpop.xlane.xlu1 %326 }
 0x109   : > { %v335_v7 = vmul.f32 -0.5, %v327_v2 }
 0x180   : > { %v796_v32 = vpop.f32.mrb[0].mxu0 }
 0x181   : > { %v408_v33 = vadd.f32 %v796_v32, %v329_v28  ;;  %v402_v34 = vpop.f32.mrb[1].mxu0 }
 0x182   : > { %v403_v35 = vadd.f32 %v402_v34, %v328_v29 }
 0x183   : > { %v448_v38 = vadd.f32 %v728_v31, %v408_v33 }
 0x184   : > { %v447_v40 = vadd.f32 %v728_v31, %v403_v35  ;;  %v799_v41 = vpop.f32.mrb[2].mxu0 }
 0x185   : > { %v456_v42 = vmin.f32 %v448_v38, 0.0  ;;  %v412_v43 = vpop.f32.mrb[3].mxu0  ;;  %v418_v45 = vadd.f32 %v799_v41, %v331_v37 }
 0x186   : > { %v455_v44 = vmin.f32 %v447_v40, 0.0  ;;  %v413_v46 = vadd.f32 %v412_v43, %v330_v36 }
 0x187   : > { %v465_v52 = vmul.f32 1.442695, %v456_v42  ;;  %v450_v56 = vadd.f32 %v728_v31, %v418_v45 }
 0x188   : > { %v463_v49 = vmul.f32 1.442695, %v455_v44  ;;  %v449_v50 = vadd.f32 %v728_v31, %v413_v46  ;;  %v802_v51 = vpop.f32.mrb[4].mxu0 }
 0x189   : > { %v422_v54 = vpop.f32.mrb[5].mxu0  ;;  %v458_v0 = vmin.f32 %v450_v56, 0.0  ;;  %v428_v1 = vadd.f32 %v802_v51, %v333_v53 }
 0x18a   : > { %944 = vpow2.f32 %v463_v49  ;;  %v457_v57 = vmin.f32 %v449_v50, 0.0  ;;  %v423_v58 = vadd.f32 %v422_v54, %v332_v48 }
 0x18b   : > { %946 = vpow2.f32 %v465_v52  ;;  %v469_v5 = vmul.f32 1.442695, %v458_v0  ;;  %v452_v6 = vadd.f32 %v728_v31, %v428_v1 }
 0x18c   : > { %v467_v59 = vmul.f32 1.442695, %v457_v57  ;;  %v451_v60 = vadd.f32 %v728_v31, %v423_v58  ;;  %v805_v62 = vpop.f32.mrb[6].mxu0 }
 0x18d   : > { %v432_v63 = vpop.f32.mrb[7].mxu0  ;;  %v460_v11 = vmin.f32 %v452_v6, 0.0  ;;  %v438_v12 = vadd.f32 %v805_v62, %v335_v7 }
 0x18e   : > { %948 = vpow2.f32 %v467_v59  ;;  %v459_v3 = vmin.f32 %v451_v60, 0.0  ;;  %v433_v4 = vadd.f32 %v432_v63, %v334_v61 }
 0x18f   : > { %950 = vpow2.f32 %v469_v5  ;;  %v473_v16 = vmul.f32 1.442695, %v460_v11  ;;  %v454_v17 = vadd.f32 %v728_v31, %v438_v12 }
 0x190   : > { %v471_v9 = vmul.f32 1.442695, %v459_v3  ;;  %v453_v10 = vadd.f32 %v728_v31, %v433_v4 }
 0x191   : > { %v462_v19 = vmin.f32 %v454_v17, 0.0 }
 0x192   : > { %952 = vpow2.f32 %v471_v9  ;;  %v461_v14 = vmin.f32 %v453_v10, 0.0 }
 0x193   : > { %954 = vpow2.f32 %v473_v16  ;;  %v477_v22 = vmul.f32 1.442695, %v462_v19 }
 0x194   : > { %v945_v8 = vpop.eup %944  ;;  %v475_v18 = vmul.f32 1.442695, %v461_v14 }
 0x195   : > { %544 = vmatmul.mubr.f32.vlgmr.msra.gmra.mrb[0].mxu1 %v945_v8  ;;  %v947_v13 = vpop.eup %946 }
 0x196   : > { %549 = vmatprep.mubr.f32.mxu1 %v1125_v24  ;;  %956 = vpow2.f32 %v475_v18 }
 0x197   : > { %958 = vpow2.f32 %v477_v22 }
 0x198   : > { %v949_v15 = vpop.eup %948 }
 0x199   : > { %550 = vmatmul.mubr.f32.gmra.mrb[2].mxu1 %v947_v13  ;;  %v951_v20 = vpop.eup %950 }
 0x19a   : > { %555 = vmatprep.mubr.f32.mxu1 %v1125_v24 }
 0x19c   : > { %v953_v21 = vpop.eup %952 }
 0x19d   : > { %556 = vmatmul.mubr.f32.gmra.mrb[4].mxu1 %v949_v15  ;;  %v955_v23 = vpop.eup %954 }
 0x19e   : > { %561 = vmatprep.mubr.f32.mxu1 %v1125_v24 }
 0x1a0   : > { %v957_v25 = vpop.eup %956 }
 0x1a1   : > { %562 = vmatmul.mubr.f32.gmra.mrb[6].mxu1 %v951_v20  ;;  %v959_v26 = vpop.eup %958 }
 0x1a2   : > { %567 = vmatprep.mubr.f32.mxu1 %v1125_v24 }
 0x1a5   : > { %568 = vmatmul.mubr.f32.gmra.mrb[8].mxu1 %v953_v21 }
 0x1a6   : > { %573 = vmatprep.mubr.f32.mxu1 %v1125_v24 }
 0x1a9   : > { %574 = vmatmul.mubr.f32.gmra.mrb[10].mxu1 %v955_v23 }
 0x1aa   : > { %579 = vmatprep.mubr.f32.mxu1 %v1125_v24 }
 0x1ad   : > { %580 = vmatmul.mubr.f32.gmra.mrb[12].mxu1 %v957_v25 }
 0x1ae   : > { %585 = vmatprep.mubr.f32.mxu1 %v1125_v24 }
 0x1b1   : > { %586 = vmatmul.mubr.f32.gmra.mrb[14].mxu1 %v959_v26 }
 0x268   : > { %v545_v27 = vpop.f32.mrb[0].mxu1 }
 0x269   : > { %592 = vst [vmem:[%s1381_s12] sm:$0xff] %v545_v27  ;;  %v547_v28 = vpop.f32.mrb[1].mxu1 }
 0x26a   : > { %593 = vst [vmem:[%s1381_s12 + $0x8] sm:$0xff] %v547_v28 }
 0x26c   : > { %v551_v24 = vpop.f32.mrb[2].mxu1 }
 0x26d   : > { %594 = vst [vmem:[%s1381_s12 + $0x10] sm:$0xff] %v551_v24  ;;  %v553_v29 = vpop.f32.mrb[3].mxu1 }
 0x26e   : > { %595 = vst [vmem:[%s1381_s12 + $0x18] sm:$0xff] %v553_v29 }
 0x270   : > { %v557_v30 = vpop.f32.mrb[4].mxu1 }
 0x271   : > { %596 = vst [vmem:[%s1381_s12 + $0x20] sm:$0xff] %v557_v30  ;;  %v559_v31 = vpop.f32.mrb[5].mxu1 }
 0x272   : > { %597 = vst [vmem:[%s1381_s12 + $0x28] sm:$0xff] %v559_v31 }
 0x274   : > { %v563_v32 = vpop.f32.mrb[6].mxu1 }
 0x275   : > { %598 = vst [vmem:[%s1381_s12 + $0x30] sm:$0xff] %v563_v32  ;;  %v565_v33 = vpop.f32.mrb[7].mxu1 }
 0x276   : > { %599 = vst [vmem:[%s1381_s12 + $0x38] sm:$0xff] %v565_v33 }
 0x278   : > { %v569_v34 = vpop.f32.mrb[8].mxu1 }
 0x279   : > { %600 = vst [vmem:[%s1381_s12 + $0x40] sm:$0xff] %v569_v34  ;;  %v571_v35 = vpop.f32.mrb[9].mxu1 }
 0x27a   : > { %601 = vst [vmem:[%s1381_s12 + $0x48] sm:$0xff] %v571_v35 }
 0x27c   : > { %v575_v36 = vpop.f32.mrb[10].mxu1 }
 0x27d   : > { %602 = vst [vmem:[%s1381_s12 + $0x50] sm:$0xff] %v575_v36  ;;  %v577_v37 = vpop.f32.mrb[11].mxu1 }
 0x27e   : > { %603 = vst [vmem:[%s1381_s12 + $0x58] sm:$0xff] %v577_v37 }
 0x280   : > { %v581_v38 = vpop.f32.mrb[12].mxu1 }
 0x281   : > { %604 = vst [vmem:[%s1381_s12 + $0x60] sm:$0xff] %v581_v38  ;;  %v583_v39 = vpop.f32.mrb[13].mxu1 }
 0x282   : > { %605 = vst [vmem:[%s1381_s12 + $0x68] sm:$0xff] %v583_v39 }
 0x284   : > { %v587_v40 = vpop.f32.mrb[14].mxu1 }
 0x285   : > { %606 = vst [vmem:[%s1381_s12 + $0x70] sm:$0xff] %v587_v40  ;;  %v589_v41 = vpop.f32.mrb[15].mxu1 }
 0x286   : > { %607 = vst [vmem:[%s1381_s12 + $0x78] sm:$0xff] %v589_v41 }
 0x287   : > { %1059 = shalt.err (!%p1056_p1)
}
 0x288   : > { %s1060_s20 = scalar_lea.hbm %s1402_s30, 2048  ;;  %s1064_s21 = scalar_lea.hbm %s1454_s4, 4096 }
 0x289   : > { %p1061_p13 = scmp.ne.s32.totalorder %s1402_s30, %s1060_s20  ;;  %p1065_p4 = scmp.lt.u32.totalorder %s1402_s30, %s1454_s4 }
 0x28a   : > { %p1066_p7 = scmp.lt.u32.totalorder %s1064_s21, %s1060_s20  ;;  %p1068_p11 = scmp.lt.u32.totalorder %s1060_s20, %s1402_s30 }
 0x28b   : > { %p1062_p6 = pnand %p1061_p13, %p1468_p0 }
 0x28c   : > { %p1067_p8 = por %p1066_p7, %p1065_p4 }
 0x28d   : > { %p1063_p10 = pneg %p1062_p6 }
 0x28e   : > { %p1069_p2 = por %p1068_p11, %p1067_p8 }
 0x290   : > { %p1070_p3 = pnand %p1069_p2, %p1063_p10 }
 0x292   : > { %1073 = shalt.err (!%p1070_p3)
}
 0x293   : > { %s1127_s12 = smov 256   ;;  %s1128_s6 = smov 16  }
 0x294   : > { %880 = dma.vmem_to_hbm [thread:$0]  (%p1468_p0), %s1404_s7, 2048, %s1402_s30, %s609_s26, %s1127_s12, %s1127_s12, %s1128_s6  }
 0x295 PF: > { %s638_s8 = sand.u32 1, %s1104_s15   ;;  %p1469_p5 = scmp.ne.s32.totalorder %s1459_s22, 0 }
 0x296   : > { %p1470_p9 = scmp.ge.s32.totalorder %s1116_s18, 2  ;;  %s639_s9 = scalar_lea.sflag [#allocation4], %s638_s8 }
 0x298   : > { %p894_p12 = pnand %p1470_p9, %p1469_p5 }
 0x29a   : > { %1099 = dma.done.wait (!%p894_p12), %s639_s9, 2048  }
 0x29b   : > { %1101 = vsyncadd (!%p894_p12), %s639_s9, 4294965248  ;;  %p18_p1 = scmp.ge.s32.totalorder %s1267_s13, 4   ;;  %s1471_s15 = smov %s1108_s16 }
 0x29c   : > { %s1472_s16 = smov %s1112_s17  ;;  %s1473_s17 = smov %s1276_s24 }
 0x29d   : > { %s1474_s18 = smov %s1267_s13  ;;  %20 = sbr.rel (!%p18_p1) target bundleno = 6 (0x6), region = 89 }
 0x2a4   :  { %644 = vsyncpa [#allocation3], 1 }
 0x2a5   :  { %646 = vsyncpa [#allocation3 + $0x1], 1 }
 0x2a6   :  { %647 = vsyncpa [#allocation6], 1 }
 0x2a7   :  { %648 = vsyncpa [#allocation4], 1 }
 0x2a8   :  { %650 = vsyncpa [#allocation4 + $0x1], 1 }

</bundles_post_ra>
